<compile_context>
chip_gen: v5e
topology: v5e:2x2
jax: 0.10.0
libtpu: 0.0.40
codegen_flags: <defaults>
</compile_context>

<pallas_src>
import jax
import jax.numpy as jnp
from jax import lax
from jax.experimental import pallas as pl
from jax.experimental.pallas import tpu as pltpu

NUM_ITERS = 3
EPSILON = 0.05
_LANE = 128


def _shoot_infs(x):
    """Vectorized shoot_infs: replace infs by the max of the de-infed tensor."""
    mask = jnp.isinf(x)
    zeroed = jnp.where(mask, jnp.zeros_like(x), x)
    return jnp.where(mask, jnp.max(zeroed), zeroed)


def _column_scaling(Q, r, *, approx):
    """u = shoot_infs(r / column_sums(Q)), with an explicit zero-column guard.

    Zero columns (lane padding / fully underflowed) get u = inf exactly like the
    torch reference (r / 0), which shoot_infs then replaces by the max finite u.
    The guard avoids relying on the approx-reciprocal's behaviour at 0.
    """
    colsum = jnp.sum(Q, axis=0, keepdims=True)                 # (1, K) sublane reduce
    dead = colsum == jnp.float32(0.0)
    safe = jnp.where(dead, jnp.float32(1.0), colsum)
    if approx:
        inv = pl.reciprocal(safe, approx=True)                 # EUP slot, ~free
    else:
        inv = jnp.float32(1.0) / safe                          # exact (tiny vector)
    u = jnp.where(dead, jnp.float32(jnp.inf), r * inv)
    return _shoot_infs(u)


def sinkhorn_kernel(logits_ref, out_ref):
    # Whole (B, K) problem resident in VMEM; K may contain zero-padding columns.
    B, K = logits_ref.shape

    # exp(q - max) <= 1  -> no +inf possible, so the reference's shoot_infs(Q)
    # and the global sum-normalisation (scale-invariant) are dropped.
    # TODO(synk): assumes finite logits (a +inf logit yields NaN in the torch
    # reference as well, so behaviour only differs for non-finite inputs).
    q = logits_ref[...].astype(jnp.float32) * jnp.float32(1.0 / EPSILON)
    Q = jnp.exp(q - jnp.max(q))                                # (B, K), in [0, 1]

    # r = 1/K, c = 1/B (torch's argsort/sort of the constant r is a no-op).
    r = jnp.float32(1.0) / jnp.float32(K)
    c = jnp.float32(1.0) / jnp.float32(B)

    # First NUM_ITERS-1 iterations: one fused elementwise pass each; the row
    # sums of the column-scaled matrix come from the (otherwise idle) MXU.
    for _ in range(NUM_ITERS - 1):
        u = _column_scaling(Q, r, approx=True)                 # (1, K)
        rowsum = lax.dot_general(                              # (B, 1) = Q @ u^T
            Q, u, (((1,), (1,)), ((), ())),
            preferred_element_type=jnp.float32)
        rowscale = c * pl.reciprocal(rowsum, approx=True)      # (B, 1)
        Q = Q * u * rowscale                                   # single fused update

    # Last iteration fused with the final normalisation:
    #   ((Q*u) * (c/rowsum)) / row_sum(...)  ==  (Q*u) / row_sum(Q*u)
    # Done in exact arithmetic so output rows sum to 1 at f32 precision.
    u = _column_scaling(Q, r, approx=False)
    Qu = Q * u
    rowsum = jnp.sum(Qu, axis=1, keepdims=True)                # (B, 1), exact
    out_ref[...] = (Qu * (jnp.float32(1.0) / rowsum)).astype(jnp.float32)


def sinkhorn_knopp(logits):
    """Pallas TPU forward for SinkhornKnopp: (B, K) logits -> (B, K) float32."""
    B, K = logits.shape

    # Lane-dense padding of K: padded logits are -inf -> exp == 0 columns that
    # contribute exactly 0 to every row sum and never perturb the real columns.
    Kp = ((K + _LANE - 1) // _LANE) * _LANE
    if Kp != K:
        pad = jnp.full((B, Kp - K), -jnp.inf, dtype=logits.dtype)
        x = jnp.concatenate([logits, pad], axis=1)
    else:
        x = logits

    # Keep ~one resident copy: alias the (f32) input HBM buffer to the output
    # and give the compiler an explicit scoped-VMEM budget sized to the tile.
    aliases = {0: 0} if x.dtype == jnp.float32 else {}
    vmem_limit = int(min(128 * 1024 * 1024,
                         max(16 * 1024 * 1024, 6 * B * Kp * 4)))

    out = pl.pallas_call(
        sinkhorn_kernel,
        out_shape=jax.ShapeDtypeStruct((B, Kp), jnp.float32),
        grid=(1,),
        in_specs=[pl.BlockSpec((B, Kp), lambda i: (0, 0))],
        out_specs=pl.BlockSpec((B, Kp), lambda i: (0, 0)),
        input_output_aliases=aliases,
        compiler_params=pltpu.CompilerParams(
            dimension_semantics=("arbitrary",),
            vmem_limit_bytes=vmem_limit,
        ),
    )(x)
    return out[:, :K] if Kp != K else out


def _sinkhorn_reference(logits):
    """Pure-JAX mirror of the PyTorch module (exact divisions, no fusion)."""
    q = logits.astype(jnp.float32) / EPSILON
    q = q - jnp.max(q)
    Q = jnp.exp(q).T                                           # (K, B)
    Q = Q / jnp.sum(Q)
    Kr, Br = Q.shape
    r = jnp.full((Kr,), 1.0 / Kr, jnp.float32)
    c = jnp.full((Br,), 1.0 / Br, jnp.float32)
    for _ in range(NUM_ITERS):
        u = r / jnp.sum(Q, axis=1)
        mask = jnp.isinf(u)
        z = jnp.where(mask, 0.0, u)
        u = jnp.where(mask, jnp.max(z), z)
        Q = Q * u[:, None]
        Q = Q * (c / jnp.sum(Q, axis=0))[None, :]
    return (Q / jnp.sum(Q, axis=0, keepdims=True)).T.astype(jnp.float32)


if __name__ == "__main__":
    key = jax.random.PRNGKey(0)
    B, K = 8, 32  # batch x num_prototypes; K gets lane-padded to 128 internally
    logits = jax.random.normal(key, (B, K), dtype=jnp.float32)

    out = jax.jit(sinkhorn_knopp)(logits)
    out = jax.block_until_ready(out)

    assert out.shape == (B, K)
    assert out.dtype == jnp.float32
    assert bool(jnp.all(jnp.isfinite(out)))
    # Per-sample assignment distributions sum to 1 (exact final normalize).
    assert bool(jnp.allclose(jnp.sum(out, axis=1),
                             jnp.ones((B,), jnp.float32), atol=1e-4))
    # Matches the exact-arithmetic reference up to the approx-reciprocal /
    # MXU-matvec rounding used inside the kernel.
    ref = _sinkhorn_reference(logits)
    assert bool(jnp.allclose(out, ref, atol=2e-2, rtol=2e-2))

    print("KERNEL_OK")
</pallas_src>

<mosaic_0001>
module attributes {stable_mosaic.version = 11 : i64} {
  func.func @sinkhorn_kernel(%arg0: i32, %arg1: memref<8x128xf32, #tpu.memory_space<vmem>>, %arg2: memref<8x128xf32, #tpu.memory_space<vmem>>) attributes {dimension_semantics = [#tpu.dimension_semantics<arbitrary>], iteration_bounds = array<i64: 1>, scalar_prefetch = 0 : i64, scratch_operands = 0 : i64, tpu.core_type = #tpu.core_type<tc>, window_params = [{pipeline_mode = #tpu.pipeline_mode<synchronous>, transform_indices = @transform_0, window_bounds = array<i64: 8, 128>}, {pipeline_mode = #tpu.pipeline_mode<synchronous>, transform_indices = @transform_1, window_bounds = array<i64: 8, 128>}]} {
    %c0 = arith.constant 0 : index
    %c0_0 = arith.constant 0 : index
    %0 = vector.load %arg1[%c0, %c0_0] : memref<8x128xf32, #tpu.memory_space<vmem>>, vector<8x128xf32>
    %cst = arith.constant 2.000000e+01 : f32
    %1 = vector.broadcast %cst : f32 to vector<8x128xf32>
    %2 = arith.mulf %0, %1 : vector<8x128xf32>
    %3 = vector.shape_cast %2 : vector<8x128xf32> to vector<1x8x128xf32>
    %cst_1 = arith.constant dense<0xFF800000> : vector<1xf32>
    %4 = vector.multi_reduction <maximumf>, %3, %cst_1 [1, 2] : vector<1x8x128xf32> to vector<1xf32>
    %5 = vector.shape_cast %4 : vector<1xf32> to vector<1x1x1xf32>
    %6 = vector.extract %5[0, 0, 0] : f32 from vector<1x1x1xf32>
    %7 = vector.broadcast %6 : f32 to vector<8x128xf32>
    %8 = arith.subf %2, %7 : vector<8x128xf32>
    %9 = math.exp %8 : vector<8x128xf32>
    %cst_2 = arith.constant 1.000000e+00 : f32
    %cst_3 = arith.constant 1.280000e+02 : f32
    %10 = arith.divf %cst_2, %cst_3 : f32
    %cst_4 = arith.constant 1.000000e+00 : f32
    %cst_5 = arith.constant 8.000000e+00 : f32
    %11 = arith.divf %cst_4, %cst_5 : f32
    %cst_6 = arith.constant dense<0.000000e+00> : vector<128xf32>
    %12 = vector.multi_reduction <add>, %9, %cst_6 [0] : vector<8x128xf32> to vector<128xf32>
    %13 = vector.shape_cast %12 : vector<128xf32> to vector<1x128xf32>
    %cst_7 = arith.constant 0.000000e+00 : f32
    %14 = vector.broadcast %cst_7 : f32 to vector<1x128xf32>
    %15 = arith.cmpf oeq, %13, %14 : vector<1x128xf32>
    %cst_8 = arith.constant 1.000000e+00 : f32
    %16 = vector.broadcast %cst_8 : f32 to vector<1x128xf32>
    %17 = arith.select %15, %16, %13 : vector<1x128xi1>, vector<1x128xf32>
    %18 = tpu.reciprocal %17 {approx = true} : vector<1x128xf32> -> vector<1x128xf32>
    %19 = vector.broadcast %10 : f32 to vector<1x128xf32>
    %20 = arith.mulf %19, %18 : vector<1x128xf32>
    %cst_9 = arith.constant 0x7F800000 : f32
    %21 = vector.broadcast %cst_9 : f32 to vector<1x128xf32>
    %22 = arith.select %15, %21, %20 : vector<1x128xi1>, vector<1x128xf32>
    %23 = math.absf %22 : vector<1x128xf32>
    %cst_10 = arith.constant 0x7F800000 : f32
    %24 = vector.broadcast %cst_10 : f32 to vector<1x128xf32>
    %25 = arith.cmpf oeq, %23, %24 : vector<1x128xf32>
    %cst_11 = arith.constant 0.000000e+00 : f32
    %26 = vector.broadcast %cst_11 : f32 to vector<1x128xf32>
    %27 = arith.select %25, %26, %22 : vector<1x128xi1>, vector<1x128xf32>
    %28 = vector.shape_cast %27 : vector<1x128xf32> to vector<1x1x128xf32>
    %cst_12 = arith.constant dense<0xFF800000> : vector<1xf32>
    %29 = vector.multi_reduction <maximumf>, %28, %cst_12 [1, 2] : vector<1x1x128xf32> to vector<1xf32>
    %30 = vector.shape_cast %29 : vector<1xf32> to vector<1x1x1xf32>
    %31 = vector.extract %30[0, 0, 0] : f32 from vector<1x1x1xf32>
    %32 = vector.broadcast %31 : f32 to vector<1x128xf32>
    %33 = arith.select %25, %32, %27 : vector<1x128xi1>, vector<1x128xf32>
    %cst_13 = arith.constant dense<0.000000e+00> : vector<8x1xf32>
    %34 = tpu.matmul %9, %33, %cst_13 {dimension_numbers = #tpu.dot_dimension_numbers<[1], [1], [0], [0], [0, 0, 1, 0], [], []>} : vector<8x128xf32>, vector<1x128xf32>, vector<8x1xf32> -> vector<8x1xf32>
    %35 = tpu.reciprocal %34 {approx = true} : vector<8x1xf32> -> vector<8x1xf32>
    %36 = vector.broadcast %11 : f32 to vector<8x1xf32>
    %37 = arith.mulf %36, %35 : vector<8x1xf32>
    %38 = vector.broadcast %33 : vector<1x128xf32> to vector<8x128xf32>
    %39 = arith.mulf %9, %38 : vector<8x128xf32>
    %40 = vector.broadcast %37 : vector<8x1xf32> to vector<8x128xf32>
    %41 = arith.mulf %39, %40 : vector<8x128xf32>
    %cst_14 = arith.constant dense<0.000000e+00> : vector<128xf32>
    %42 = vector.multi_reduction <add>, %41, %cst_14 [0] : vector<8x128xf32> to vector<128xf32>
    %43 = vector.shape_cast %42 : vector<128xf32> to vector<1x128xf32>
    %cst_15 = arith.constant 0.000000e+00 : f32
    %44 = vector.broadcast %cst_15 : f32 to vector<1x128xf32>
    %45 = arith.cmpf oeq, %43, %44 : vector<1x128xf32>
    %cst_16 = arith.constant 1.000000e+00 : f32
    %46 = vector.broadcast %cst_16 : f32 to vector<1x128xf32>
    %47 = arith.select %45, %46, %43 : vector<1x128xi1>, vector<1x128xf32>
    %48 = tpu.reciprocal %47 {approx = true} : vector<1x128xf32> -> vector<1x128xf32>
    %49 = vector.broadcast %10 : f32 to vector<1x128xf32>
    %50 = arith.mulf %49, %48 : vector<1x128xf32>
    %cst_17 = arith.constant 0x7F800000 : f32
    %51 = vector.broadcast %cst_17 : f32 to vector<1x128xf32>
    %52 = arith.select %45, %51, %50 : vector<1x128xi1>, vector<1x128xf32>
    %53 = math.absf %52 : vector<1x128xf32>
    %cst_18 = arith.constant 0x7F800000 : f32
    %54 = vector.broadcast %cst_18 : f32 to vector<1x128xf32>
    %55 = arith.cmpf oeq, %53, %54 : vector<1x128xf32>
    %cst_19 = arith.constant 0.000000e+00 : f32
    %56 = vector.broadcast %cst_19 : f32 to vector<1x128xf32>
    %57 = arith.select %55, %56, %52 : vector<1x128xi1>, vector<1x128xf32>
    %58 = vector.shape_cast %57 : vector<1x128xf32> to vector<1x1x128xf32>
    %cst_20 = arith.constant dense<0xFF800000> : vector<1xf32>
    %59 = vector.multi_reduction <maximumf>, %58, %cst_20 [1, 2] : vector<1x1x128xf32> to vector<1xf32>
    %60 = vector.shape_cast %59 : vector<1xf32> to vector<1x1x1xf32>
    %61 = vector.extract %60[0, 0, 0] : f32 from vector<1x1x1xf32>
    %62 = vector.broadcast %61 : f32 to vector<1x128xf32>
    %63 = arith.select %55, %62, %57 : vector<1x128xi1>, vector<1x128xf32>
    %cst_21 = arith.constant dense<0.000000e+00> : vector<8x1xf32>
    %64 = tpu.matmul %41, %63, %cst_21 {dimension_numbers = #tpu.dot_dimension_numbers<[1], [1], [0], [0], [0, 0, 1, 0], [], []>} : vector<8x128xf32>, vector<1x128xf32>, vector<8x1xf32> -> vector<8x1xf32>
    %65 = tpu.reciprocal %64 {approx = true} : vector<8x1xf32> -> vector<8x1xf32>
    %66 = vector.broadcast %11 : f32 to vector<8x1xf32>
    %67 = arith.mulf %66, %65 : vector<8x1xf32>
    %68 = vector.broadcast %63 : vector<1x128xf32> to vector<8x128xf32>
    %69 = arith.mulf %41, %68 : vector<8x128xf32>
    %70 = vector.broadcast %67 : vector<8x1xf32> to vector<8x128xf32>
    %71 = arith.mulf %69, %70 : vector<8x128xf32>
    %cst_22 = arith.constant dense<0.000000e+00> : vector<128xf32>
    %72 = vector.multi_reduction <add>, %71, %cst_22 [0] : vector<8x128xf32> to vector<128xf32>
    %73 = vector.shape_cast %72 : vector<128xf32> to vector<1x128xf32>
    %cst_23 = arith.constant 0.000000e+00 : f32
    %74 = vector.broadcast %cst_23 : f32 to vector<1x128xf32>
    %75 = arith.cmpf oeq, %73, %74 : vector<1x128xf32>
    %cst_24 = arith.constant 1.000000e+00 : f32
    %76 = vector.broadcast %cst_24 : f32 to vector<1x128xf32>
    %77 = arith.select %75, %76, %73 : vector<1x128xi1>, vector<1x128xf32>
    %cst_25 = arith.constant 1.000000e+00 : f32
    %78 = vector.broadcast %cst_25 : f32 to vector<1x128xf32>
    %79 = arith.divf %78, %77 : vector<1x128xf32>
    %80 = vector.broadcast %10 : f32 to vector<1x128xf32>
    %81 = arith.mulf %80, %79 : vector<1x128xf32>
    %cst_26 = arith.constant 0x7F800000 : f32
    %82 = vector.broadcast %cst_26 : f32 to vector<1x128xf32>
    %83 = arith.select %75, %82, %81 : vector<1x128xi1>, vector<1x128xf32>
    %84 = math.absf %83 : vector<1x128xf32>
    %cst_27 = arith.constant 0x7F800000 : f32
    %85 = vector.broadcast %cst_27 : f32 to vector<1x128xf32>
    %86 = arith.cmpf oeq, %84, %85 : vector<1x128xf32>
    %cst_28 = arith.constant 0.000000e+00 : f32
    %87 = vector.broadcast %cst_28 : f32 to vector<1x128xf32>
    %88 = arith.select %86, %87, %83 : vector<1x128xi1>, vector<1x128xf32>
    %89 = vector.shape_cast %88 : vector<1x128xf32> to vector<1x1x128xf32>
    %cst_29 = arith.constant dense<0xFF800000> : vector<1xf32>
    %90 = vector.multi_reduction <maximumf>, %89, %cst_29 [1, 2] : vector<1x1x128xf32> to vector<1xf32>
    %91 = vector.shape_cast %90 : vector<1xf32> to vector<1x1x1xf32>
    %92 = vector.extract %91[0, 0, 0] : f32 from vector<1x1x1xf32>
    %93 = vector.broadcast %92 : f32 to vector<1x128xf32>
    %94 = arith.select %86, %93, %88 : vector<1x128xi1>, vector<1x128xf32>
    %95 = vector.broadcast %94 : vector<1x128xf32> to vector<8x128xf32>
    %96 = arith.mulf %71, %95 : vector<8x128xf32>
    %cst_30 = arith.constant dense<0.000000e+00> : vector<8xf32>
    %97 = vector.multi_reduction <add>, %96, %cst_30 [1] : vector<8x128xf32> to vector<8xf32>
    %98 = vector.shape_cast %97 : vector<8xf32> to vector<8x1xf32>
    %cst_31 = arith.constant 1.000000e+00 : f32
    %99 = vector.broadcast %cst_31 : f32 to vector<8x1xf32>
    %100 = arith.divf %99, %98 : vector<8x1xf32>
    %101 = vector.broadcast %100 : vector<8x1xf32> to vector<8x128xf32>
    %102 = arith.mulf %96, %101 : vector<8x128xf32>
    %c0_32 = arith.constant 0 : index
    %c0_33 = arith.constant 0 : index
    %103 = vector.load %arg2[%c0_32, %c0_33] : memref<8x128xf32, #tpu.memory_space<vmem>>, vector<8x128xf32>
    tpu.vector_store %arg2[%c0_32, %c0_33], %102 {strides = array<i32>} : memref<8x128xf32, #tpu.memory_space<vmem>>, vector<8x128xf32>,
    return
  }
  func.func @transform_0(%arg0: i32) -> (i32, i32) {
    %c0_i32 = arith.constant 0 : i32
    %c0_i32_0 = arith.constant 0 : i32
    %c0_i32_1 = arith.constant 0 : i32
    return %c0_i32, %c0_i32_0 : i32, i32
  }
  func.func @transform_1(%arg0: i32) -> (i32, i32) {
    %c0_i32 = arith.constant 0 : i32
    %c0_i32_0 = arith.constant 0 : i32
    %c0_i32_1 = arith.constant 0 : i32
    return %c0_i32, %c0_i32_0 : i32, i32
  }
}

</mosaic_0001>

<bundles_post_ra>
// kernel: sinkhorn_knopp.1
= control target key start
LH: loop header
LB: loop body
LE: loop exit
PB: predicated region body
PF: predicated region fallthrough
CT: control target
= control target key end

     0   :  { %s170_s0 = inlined_call_operand.vmem [shape: f32[8,128], index: 0, kind: input, shape index: {}, may-alias: {0,1}]   ;;  %s171_s1 = inlined_call_operand.vmem [shape: f32[8,128], index: 1, kind: output, shape index: {}, may-alias: {0,1}]  }
   0x1   :  { %v8_v0 = vld [vmem:[%s170_s0] sm:$0xff] }
   0x2   :  { %v9_v1 = vmul.f32 20.0, %v8_v0 }
   0x4   :  { %10 = vmax.xlane.f32.xlu0 %v9_v1 }
  0x77   :  { %v11_v2 = vpop.xlane.xlu0 %10 }
  0x78   :  { %v12_v3 = vrot.slane %v11_v2, 4 }
  0x7a   :  { %v13_v4 = vmax.f32 %v11_v2, %v12_v3 }
  0x7c   :  { %v14_v5 = vrot.slane %v13_v4, 2 }
  0x7e   :  { %v15_v6 = vmax.f32 %v13_v4, %v14_v5 }
  0x80   :  { %v16_v7 = vrot.slane %v15_v6, 1 }
  0x82   :  { %v17_v8 = vmax.f32 %v15_v6, %v16_v7 }
  0x84   :  { %130 = vpush %v17_v8 }
  0xb5   :  { %s131_s8 = spop %130 }
  0xb6   :  { %v19_v9 = vstv %s131_s8 }
  0xb7   :  { %v20_v10 = vsub.f32 %v9_v1, %v19_v9 }
  0xb9   :  { %v21_v11 = vmul.f32 1.442695, %v20_v10 }
  0xbb   :  { %138 = vpow2.f32 %v21_v11 }
  0xc1   :  { %v139_v12 = vpop.eup %138 }
  0xc2   :  { %v23_v13 = vrot.slane %v139_v12, 4 }
  0xc4   :  { %v24_v14 = vadd.f32 %v139_v12, %v23_v13 }
  0xc6   :  { %v25_v15 = vrot.slane %v24_v14, 2 }
  0xc8   :  { %v26_v16 = vadd.f32 %v25_v15, %v24_v14 }
  0xca   :  { %v27_v17 = vrot.slane %v26_v16, 1 }
  0xcc   :  { %v28_v18 = vadd.f32 %v27_v17, %v26_v16 }
  0xce   :  { %vm29_vm0 = vcmp.eq.f32.partialorder %v28_v18, 0.0 }
  0xcf   :  { %v30_v19 = vsel %vm29_vm0, 1.0, %v28_v18 }
  0xd0   :  { %140 = vrcp.f32 %v30_v19 }
  0xd6   :  { %v141_v20 = vpop.eup %140 }
  0xd7   :  { %v32_v21 = vmul.f32 0.0078125, %v141_v20 }
  0xd9   :  { %v33_v22 = vsel %vm29_vm0, inf, %v32_v21 }
  0xda   :  { %v34_v23 = vand.u32 2147483647, %v33_v22 }
  0xdc   :  { %vm35_vm1 = vcmp.eq.f32.partialorder %v34_v23, inf }
  0xdd   :  { %v36_v24 = vsel %vm35_vm1, 0.0, %v33_v22 }
  0xde   :  { %37 = vmax.xlane.f32.xlu0 %v36_v24 }
 0x151   :  { %v38_v25 = vpop.xlane.xlu0 %37 }
 0x152   :  { %132 = vpush %v38_v25 }
 0x183   :  { %s133_s0 = spop %132 }
 0x184   :  { %v40_v26 = vstv %s133_s0 }
 0x185   :  { %v41_v27 = vsel %vm35_vm1, %v40_v26, %v33_v22 }
 0x186   :  { %v42_v28 = vmul.f32 %v139_v12, %v41_v27 }
 0x188   :  { %43 = vadd.xlane.f32.xlu1 %v42_v28 }
 0x1fb   :  { %v44_v29 = vpop.xlane.xlu1 %43 }
 0x1fc   :  { %142 = vrcp.f32 %v44_v29 }
 0x202   :  { %v143_v30 = vpop.eup %142 }
 0x203   :  { %v46_v31 = vmul.f32 0.125, %v143_v30 }
 0x205   :  { %v47_v32 = vmul.f32 %v46_v31, %v42_v28 }
 0x207   :  { %v48_v33 = vrot.slane %v47_v32, 4 }
 0x209   :  { %v49_v34 = vadd.f32 %v48_v33, %v47_v32 }
 0x20b   :  { %v50_v35 = vrot.slane %v49_v34, 2 }
 0x20d   :  { %v51_v36 = vadd.f32 %v50_v35, %v49_v34 }
 0x20f   :  { %v52_v37 = vrot.slane %v51_v36, 1 }
 0x211   :  { %v53_v38 = vadd.f32 %v52_v37, %v51_v36 }
 0x213   :  { %vm54_vm2 = vcmp.eq.f32.partialorder %v53_v38, 0.0 }
 0x214   :  { %v55_v39 = vsel %vm54_vm2, 1.0, %v53_v38 }
 0x215   :  { %144 = vrcp.f32 %v55_v39 }
 0x21b   :  { %v145_v40 = vpop.eup %144 }
 0x21c   :  { %v57_v41 = vmul.f32 0.0078125, %v145_v40 }
 0x21e   :  { %v58_v42 = vsel %vm54_vm2, inf, %v57_v41 }
 0x21f   :  { %v59_v43 = vand.u32 2147483647, %v58_v42 }
 0x221   :  { %vm60_vm3 = vcmp.eq.f32.partialorder %v59_v43, inf }
 0x222   :  { %v61_v44 = vsel %vm60_vm3, 0.0, %v58_v42 }
 0x223   :  { %62 = vmax.xlane.f32.xlu1 %v61_v44 }
 0x296   :  { %v63_v45 = vpop.xlane.xlu1 %62 }
 0x297   :  { %134 = vpush %v63_v45 }
 0x2c8   :  { %s135_s9 = spop %134 }
 0x2c9   :  { %v65_v46 = vstv %s135_s9 }
 0x2ca   :  { %v66_v47 = vsel %vm60_vm3, %v65_v46, %v58_v42 }
 0x2cb   :  { %v67_v48 = vmul.f32 %v66_v47, %v47_v32 }
 0x2cd   :  { %68 = vadd.xlane.f32.xlu2 %v67_v48 }
 0x340   :  { %v69_v49 = vpop.xlane.xlu2 %68 }
 0x341   :  { %146 = vrcp.f32 %v69_v49 }
 0x347   :  { %v147_v50 = vpop.eup %146 }
 0x348   :  { %v71_v51 = vmul.f32 0.125, %v147_v50 }
 0x34a   :  { %v72_v52 = vmul.f32 %v71_v51, %v67_v48 }
 0x34c   :  { %v73_v53 = vrot.slane %v72_v52, 4 }
 0x34e   :  { %v74_v54 = vadd.f32 %v73_v53, %v72_v52 }
 0x350   :  { %v75_v55 = vrot.slane %v74_v54, 2 }
 0x352   :  { %v76_v56 = vadd.f32 %v75_v55, %v74_v54 }
 0x354   :  { %v77_v57 = vrot.slane %v76_v56, 1 }
 0x356   :  { %v78_v58 = vadd.f32 %v77_v57, %v76_v56 }
 0x358   :  { %vm79_vm4 = vcmp.eq.f32.partialorder %v78_v58, 0.0 }
 0x359   :  { %v80_v59 = vsel %vm79_vm4, 1.0, %v78_v58 }
 0x35a   :  { %148 = vrcp.f32 %v80_v59  ;;  %v92_v63 = vand.u32 2147483648, %v80_v59  ;;  %v90_v1 = vand.u32 2147483647, %v80_v59  ;;  %vm86_vm6 = vweird.f32 %v80_v59 }
 0x35c   :  { %v93_v3 = vor.u32 1.1754944e-38, %v92_v63  ;;  %vm91_vm8 = vcmp.eq.f32.partialorder %v90_v1, 8.507059e+37 }
 0x360   :  { %v149_v60 = vpop.eup %148 }
 0x361   :  { %v82_v61 = vmul.f32 %v149_v60, %v80_v59  ;;  %vm87_vm5 = vweird.f32 %v149_v60 }
 0x362   :  { %vm88_vm7 = vmor %vm86_vm6, %vm87_vm5 }
 0x363   :  { %v83_v62 = vsub.f32 1.0, %v82_v61 }
 0x365   :  { %v84_v0 = vmul.f32 %v149_v60, %v83_v62 }
 0x367   :  { %v85_v2 = vadd.f32 %v149_v60, %v84_v0 }
 0x369   :  { %v89_v4 = vsel %vm88_vm7, %v149_v60, %v85_v2 }
 0x36a   :  { %v94_v5 = vsel %vm91_vm8, %v93_v3, %v89_v4 }
 0x36b   :  { %v96_v6 = vmul.f32 0.0078125, %v94_v5 }
 0x36d   :  { %v97_v7 = vsel %vm79_vm4, inf, %v96_v6 }
 0x36e   :  { %v98_v8 = vand.u32 2147483647, %v97_v7 }
 0x370   :  { %vm99_vm9 = vcmp.eq.f32.partialorder %v98_v8, inf }
 0x371   :  { %v100_v9 = vsel %vm99_vm9, 0.0, %v97_v7 }
 0x372   :  { %101 = vmax.xlane.f32.xlu2 %v100_v9 }
 0x3e5   :  { %v102_v10 = vpop.xlane.xlu2 %101 }
 0x3e6   :  { %136 = vpush %v102_v10 }
 0x417   :  { %s137_s10 = spop %136 }
 0x418   :  { %v104_v11 = vstv %s137_s10 }
 0x419   :  { %v105_v12 = vsel %vm99_vm9, %v104_v11, %v97_v7 }
 0x41a   :  { %v106_v13 = vmul.f32 %v105_v12, %v72_v52 }
 0x41c   :  { %107 = vadd.xlane.f32.xlu0 %v106_v13 }
 0x48f   :  { %v108_v14 = vpop.xlane.xlu0 %107 }
 0x490   :  { %150 = vrcp.f32 %v108_v14  ;;  %v120_v18 = vand.u32 2147483648, %v108_v14  ;;  %v118_v20 = vand.u32 2147483647, %v108_v14  ;;  %vm114_vm11 = vweird.f32 %v108_v14 }
 0x492   :  { %v121_v22 = vor.u32 1.1754944e-38, %v120_v18  ;;  %vm119_vm13 = vcmp.eq.f32.partialorder %v118_v20, 8.507059e+37 }
 0x496   :  { %v151_v15 = vpop.eup %150 }
 0x497   :  { %v110_v16 = vmul.f32 %v151_v15, %v108_v14  ;;  %vm115_vm10 = vweird.f32 %v151_v15 }
 0x498   :  { %vm116_vm12 = vmor %vm114_vm11, %vm115_vm10 }
 0x499   :  { %v111_v17 = vsub.f32 1.0, %v110_v16 }
 0x49b   :  { %v112_v19 = vmul.f32 %v151_v15, %v111_v17 }
 0x49d   :  { %v113_v21 = vadd.f32 %v151_v15, %v112_v19 }
 0x49f   :  { %v117_v23 = vsel %vm116_vm12, %v151_v15, %v113_v21 }
 0x4a0   :  { %v122_v24 = vsel %vm119_vm13, %v121_v22, %v117_v23 }
 0x4a1   :  { %v124_v25 = vmul.f32 %v122_v24, %v106_v13 }
 0x4a3   :  { %125 = vst [vmem:[%s171_s1] sm:$0xff] %v124_v25 }

</bundles_post_ra>
